<compile_context>
chip_gen: v6e
topology: v6e:2x2x1
jax: 0.10.0
libtpu: 0.0.40
codegen_flags: <defaults>
</compile_context>

<pallas_src>
import math

import jax
import jax.numpy as jnp
from jax.experimental import pallas as pl
from jax.experimental.pallas import tpu as pltpu


def _drop_path_kernel(scale_ref, x_ref, o_ref):
    # scale_ref: (TR, 1)  f32 per-row scale (0.0 for dropped samples, 1/keep_prob otherwise)
    # x_ref:     (TR, TC) input tile
    # o_ref:     (TR, TC) output tile
    o_ref[...] = (x_ref[...].astype(jnp.float32) * scale_ref[...]).astype(o_ref.dtype)


def _sublane_multiple(dtype):
    # Sub-32-bit dtypes pack along sublanes: 8 rows for f32, 16 for bf16, 32 for int8/fp8.
    itemsize = jnp.dtype(dtype).itemsize
    return max(8, 32 // itemsize)


def _tpu_generation_params():
    """(per-buffer tile target bytes, vmem_limit_bytes or None) for the local TPU."""
    kind = ""
    try:
        kind = jax.devices()[0].device_kind.lower()
    except Exception:  # pragma: no cover - defensive, e.g. no devices at trace time
        pass
    if "v7" in kind:
        # ~3.2 TB/s HBM: big tiles amortize the ~0.35us/step overhead.  Raise the
        # scoped-VMEM limit above the 32 MiB default (64 MiB physical on v7x).
        return 8 * 1024 * 1024, 48 << 20
    if "v6" in kind:
        # ~6 MiB/buffer -> ~24 MiB double-buffered, fits the 32 MiB scoped default.
        return 6 * 1024 * 1024, None
    # v5e (and unknown): stay comfortably under the 16 MiB scoped default.
    return 2 * 1024 * 1024, None


def _choose_tc(n, b):
    """Dense path: largest lane tile (multiple of 128, <=2048) dividing n with >=8 rows."""
    cands = [tc for tc in (2048, 1536, 1024, 768, 512, 384, 256, 128) if n % tc == 0]
    for tc in cands:
        if b * (n // tc) >= 8:
            return tc
    return cands[-1]  # tiny tensor: maximize rows anyway


def _choose_tr(r, tc, dtype, target_bytes):
    """Row tile: ~target_bytes per buffer, dtype-aware sublane multiple, prefer a divisor of r."""
    sub = _sublane_multiple(dtype)
    itemsize = jnp.dtype(dtype).itemsize
    if r <= sub:
        return r
    tr = min(r, max(sub, target_bytes // (tc * itemsize)))
    tr = max(sub, (tr // sub) * sub)
    # Prefer a tr that evenly divides r (avoids a partial trailing row-block).
    t = tr
    while t >= sub:
        if r % t == 0:
            return t
        t -= sub
    return tr  # fall back: partial last block; Pallas masks the OOB stores.


def _run_scale_rows(x_rows, scale_rows, tc):
    """Tiled, pipelined out[r, c] = x[r, c] * scale[r]."""
    r, c = x_rows.shape
    target_bytes, vmem_limit = _tpu_generation_params()
    tr = _choose_tr(r, tc, x_rows.dtype, target_bytes)
    grid = (pl.cdiv(r, tr), pl.cdiv(c, tc))

    return pl.pallas_call(
        _drop_path_kernel,
        out_shape=jax.ShapeDtypeStruct((r, c), x_rows.dtype),
        grid_spec=pltpu.PrefetchScalarGridSpec(
            num_scalar_prefetch=0,
            grid=grid,
            in_specs=[
                pl.BlockSpec((tr, 1), lambda i, j: (i, 0)),   # per-row scale
                pl.BlockSpec((tr, tc), lambda i, j: (i, j)),  # feature tile
            ],
            out_specs=pl.BlockSpec((tr, tc), lambda i, j: (i, j)),
        ),
        compiler_params=pltpu.CompilerParams(
            dimension_semantics=("parallel", "parallel"),  # independent tiles
            vmem_limit_bytes=vmem_limit,
        ),
    )(scale_rows, x_rows)


def drop_path(x, drop_prob, training, key):
    """JAX/Pallas equivalent of the timm-style drop_path used by DropPath."""
    if (drop_prob is None) or (drop_prob == 0.0) or (not training):
        return x
    drop_prob = float(drop_prob)
    if drop_prob >= 1.0:
        # keep_prob == 0: every sample is dropped; avoid the 1/0 at trace time.
        return jnp.zeros_like(x)

    keep_prob = 1.0 - drop_prob
    b = x.shape[0]
    n = math.prod(x.shape[1:])

    # Per-sample keep decision: floor(keep_prob + U) == (U >= drop_prob).
    # Fold the 1/keep_prob scale in here (f32) so the kernel is a single multiply.
    u = jax.random.uniform(key, (b,), dtype=jnp.float32)
    scale = jnp.where(u >= jnp.float32(drop_prob),
                      jnp.float32(1.0 / keep_prob),
                      jnp.float32(0.0))

    x_flat = x.reshape(b, n)

    if n % 128 == 0:
        # Dense path: lane/sublane-dense (R, TC) rows, per-row scale.
        tc = _choose_tc(n, b)
        rows_per_sample = n // tc
        r = b * rows_per_sample
        x_rows = x_flat.reshape(r, tc)
        scale_rows = jnp.repeat(scale, rows_per_sample).reshape(r, 1)
        out_rows = _run_scale_rows(x_rows, scale_rows, tc)
        return out_rows.reshape(x.shape)

    # Ragged path (n % 128 != 0): keep (B, N) and let the cdiv grid / masked
    # partial last column block handle the tail inside the kernel — no extra
    # pad + slice HBM passes.
    if n < 128:
        tc = n  # block equals the full array dim (allowed)
    else:
        tc = min(2048, (n // 128) * 128)
    scale_rows = scale.reshape(b, 1)
    out_flat = _run_scale_rows(x_flat, scale_rows, tc)
    return out_flat.reshape(x.shape)


class DropPath:
    """Drop paths (Stochastic Depth) per sample (main path of residual blocks)."""

    def __init__(self, drop_prob=None):
        self.drop_prob = drop_prob
        self.training = True

    def __call__(self, x, key):
        return drop_path(x, self.drop_prob, self.training, key)


if __name__ == "__main__":
    key = jax.random.PRNGKey(0)
    kx, kmask, kx2 = jax.random.split(key, 3)

    # NCHW like PyTorch: batch=2, channels=4, spatial=16x16  (N = 1024 -> dense path)
    x = jax.random.normal(kx, (2, 4, 16, 16), dtype=jnp.float32)

    module = DropPath(drop_prob=0.25)

    # Training path (stochastic depth active)
    out_train = jax.block_until_ready(module(x, kmask))

    # Reference check against pure-JAX semantics (same RNG draw as the wrapper).
    keep_prob = 1.0 - 0.25
    u = jax.random.uniform(kmask, (2,), dtype=jnp.float32)
    mask = (u >= jnp.float32(0.25)).astype(jnp.float32).reshape(2, 1, 1, 1)
    ref = x / keep_prob * mask
    assert jnp.allclose(out_train, ref, atol=1e-6), "mismatch vs reference (dense path)"

    # Ragged-N path (N = 4*7*9 = 252, not a multiple of 128): exercised in-kernel,
    # no pad/slice extra passes.
    x2 = jax.random.normal(kx2, (2, 4, 7, 9), dtype=jnp.float32)
    out2 = jax.block_until_ready(module(x2, kmask))
    ref2 = x2 / keep_prob * mask
    assert jnp.allclose(out2, ref2, atol=1e-6), "mismatch vs reference (ragged path)"

    # drop_prob >= 1.0 guard: all samples dropped, no divide-by-zero at trace time.
    module_all = DropPath(drop_prob=1.0)
    out_all = jax.block_until_ready(module_all(x, kmask))
    assert jnp.allclose(out_all, jnp.zeros_like(x)), "drop_prob=1.0 must be all zeros"

    # Eval path (identity)
    module.training = False
    out_eval = jax.block_until_ready(module(x, kmask))
    assert jnp.allclose(out_eval, x), "eval path must be identity"

    print("KERNEL_OK")
</pallas_src>

<mosaic_0001>
module attributes {stable_mosaic.version = 11 : i64} {
  func.func @_drop_path_kernel(%arg0: i32, %arg1: i32, %arg2: memref<8x1xf32, #tpu.memory_space<vmem>>, %arg3: memref<8x256xf32, #tpu.memory_space<vmem>>, %arg4: memref<8x256xf32, #tpu.memory_space<vmem>>) attributes {dimension_semantics = [#tpu.dimension_semantics<parallel>, #tpu.dimension_semantics<parallel>], iteration_bounds = array<i64: 1, 1>, scalar_prefetch = 0 : i64, scratch_operands = 0 : i64, tpu.core_type = #tpu.core_type<tc>, window_params = [{transform_indices = @transform_0, window_bounds = array<i64: 8, 1>}, {transform_indices = @transform_1, window_bounds = array<i64: 8, 256>}, {transform_indices = @transform_2, window_bounds = array<i64: 8, 256>}]} {
    %c0 = arith.constant 0 : index
    %c0_0 = arith.constant 0 : index
    %0 = vector.load %arg3[%c0, %c0_0] : memref<8x256xf32, #tpu.memory_space<vmem>>, vector<8x256xf32>
    %c0_1 = arith.constant 0 : index
    %c0_2 = arith.constant 0 : index
    %1 = vector.load %arg2[%c0_1, %c0_2] : memref<8x1xf32, #tpu.memory_space<vmem>>, vector<8x1xf32>
    %2 = vector.broadcast %1 : vector<8x1xf32> to vector<8x256xf32>
    %3 = arith.mulf %0, %2 : vector<8x256xf32>
    %c0_3 = arith.constant 0 : index
    %c0_4 = arith.constant 0 : index
    %4 = vector.load %arg4[%c0_3, %c0_4] : memref<8x256xf32, #tpu.memory_space<vmem>>, vector<8x256xf32>
    tpu.vector_store %arg4[%c0_3, %c0_4], %3 {strides = array<i32>} : memref<8x256xf32, #tpu.memory_space<vmem>>, vector<8x256xf32>,
    return
  }
  func.func @transform_0(%arg0: i32, %arg1: i32) -> (i32, i32) {
    %c0_i32 = arith.constant 0 : i32
    %c0_i32_0 = arith.constant 0 : i32
    return %arg0, %c0_i32 : i32, i32
  }
  func.func @transform_1(%arg0: i32, %arg1: i32) -> (i32, i32) {
    %c0_i32 = arith.constant 0 : i32
    return %arg0, %arg1 : i32, i32
  }
  func.func @transform_2(%arg0: i32, %arg1: i32) -> (i32, i32) {
    %c0_i32 = arith.constant 0 : i32
    return %arg0, %arg1 : i32, i32
  }
}

</mosaic_0001>

<bundles_post_ra>
// kernel: tpu_custom_call.1
= control target key start
LH: loop header
LB: loop body
LE: loop exit
PB: predicated region body
PF: predicated region fallthrough
CT: control target
= control target key end

     0   :  { %7 = vsyncpa [#allocation3], 0  ;;  %s126_s0 = inlined_call_operand.vmem [shape: f32[8,1], index: 0, kind: input, shape index: {}]   ;;  %s127_s1 = inlined_call_operand.hbm [shape: f32[8,256], index: 1, kind: input, shape index: {}]   ;;  %s128_s2 = inlined_call_operand.hbm [shape: f32[8,256], index: 2, kind: output, shape index: {}]  }
   0x1   :  { %8 = vsyncpa [#allocation4], 0  ;;  %s99_s9 = smov [#allocation2]  }
   0x2   :  { %s17_s10 = sshll.u32 %s99_s9, 4  ;;  %s18_s10 = int_to_ptr.vmem [resolvable:$true] %s17_s10 }
   0x3   :  { %s63_s11 = scalar_lea.vmem %s18_s10, 256  ;;  %p68_p1 = scmp.lt.s32.totalorder %s18_s10, %s18_s10 }
   0x4   :  { %p64_p0 = scmp.ne.s32.totalorder %s18_s10, %s63_s11  ;;  %p69_p2 = scmp.lt.s32.totalorder %s63_s11, %s63_s11 }
   0x6   :  { %p70_p3 = por %p69_p2, %p68_p1 }
   0x8   :  { %p71_p4 = pnand %p70_p3, %p64_p0 }
   0xa   :  { %74 = shalt.err (!%p71_p4)
}
   0xb   :  { %20 = dma.hbm_to_vmem [thread:$0]  %s127_s1, 256, %s18_s10, [#allocation3]  }
   0xc   :  { %95 = dma.done.wait [#allocation3], 256  }
   0xd   :  { %96 = vsyncadd [#allocation3], 4294967040  ;;  %v100_v0 = vmov 0   ;;  %v26_v1 = vld [vmem:[%s126_s0] sm:$0xff]  ;;  %v25_v3 = vld [vmem:[#allocation2 + $0x8] sm:$0xff]  ;;  %s101_s16 = smov [#allocation5]  }
   0xe   :  { %54 = vset.pattern.permute.xlu0 %v100_v0  ;;  %v24_v2 = vld [vmem:[#allocation2] sm:$0xff]  ;;  %s42_s17 = sshll.u32 %s101_s16, 4  ;;  %s43_s17 = int_to_ptr.vmem [resolvable:$true] %s42_s17 }
   0xf   :  { %29 = vperm.xlu0 %54, %v26_v1   ;;  %s75_s1 = scalar_lea.vmem %s43_s17, 256  ;;  %p80_p6 = scmp.lt.s32.totalorder %s43_s17, %s43_s17 }
  0x10   :  { %p76_p5 = scmp.ne.s32.totalorder %s43_s17, %s75_s1  ;;  %p81_p7 = scmp.lt.s32.totalorder %s75_s1, %s75_s1 }
  0x12   :  { %p82_p8 = por %p81_p7, %p80_p6 }
  0x14   :  { %p83_p9 = pnand %p82_p8, %p76_p5 }
  0x8a   :  { %v30_v4 = vpop.permute.xlu0 %29 }
  0x8b   :  { %v32_v5 = vmul.f32 %v30_v4, %v24_v2  ;;  %v33_v6 = vmul.f32 %v30_v4, %v25_v3 }
  0x8d   :  { %34 = vst [vmem:[#allocation5] sm:$0xff] %v32_v5  ;;  %35 = vst [vmem:[#allocation5 + $0x8] sm:$0xff] %v33_v6 }
  0x8e   :  { %86 = shalt.err (!%p83_p9)
}
  0x8f   :  { %45 = dma.vmem_to_hbm [thread:$0]  %s43_s17, 256, %s128_s2, [#allocation4]  }
  0x90   :  { %97 = dma.done.wait [#allocation4], 256  }
  0x91   :  { %98 = vsyncadd [#allocation4], 4294967040 }
  0x92   :  { %49 = vsyncpa [#allocation3], 1 }
  0x93   :  { %50 = vsyncpa [#allocation4], 1 }

</bundles_post_ra>
